<compile_context>
chip_gen: v5e
topology: v5e:2x2
jax: 0.10.0
libtpu: 0.0.40
codegen_flags: <defaults>
</compile_context>

<pallas_src>
import functools

import jax
import jax.numpy as jnp
from jax import lax
from jax.experimental import pallas as pl
from jax.experimental.pallas import tpu as pltpu


def _round_up(x, m):
    return (x + m - 1) // m * m


def _select_tiles(N, D, *, bn, bk):
    """Clamp requested tile sizes to the problem; keep >= 2 N tiles when
    possible so the 'parallel' N axis shards across v7x's two TensorCores."""
    tiles128 = _round_up(N, 128) // 128
    bn = min(bn, tiles128 * 128)
    if tiles128 >= 2:
        bn = min(bn, (tiles128 // 2) * 128)
    bk = min(bk, _round_up(D, 128))
    return bn, bk


def prepare_snn_linear_params(weight, bias, *, time_step, level, bn=512, bk=2048):
    """One-time (model-load-time) preparation of the converted linear layer.

    weight: [N, D] float32 (PyTorch nn.Linear convention)
    bias:   [N]    float32 (raw ANN bias; the wrapper divides it by step)

    Returns a dict of device arrays + static tiling metadata to be reused by
    every forward call (do NOT rebuild per call — that triples weight traffic).
    """
    step = level // 2 - 1
    if step < 1:
        raise ValueError(f"level={level} gives step={step}; need level >= 4")
    N, D = weight.shape
    bn, bk = _select_tiles(N, D, bn=bn, bk=bk)
    N_pad = _round_up(N, bn)
    D_pad = _round_up(D, bk)

    # Pre-transposed [D, N], zero-padded, bf16 (halves weight DMA bytes,
    # full MXU bf16 rate, f32 accumulation in the kernel).
    w_t = jnp.zeros((D_pad, N_pad), jnp.bfloat16)
    w_t = w_t.at[:D, :N].set(weight.T.astype(jnp.bfloat16))

    # Converted bias = bias/step added once per time step -> total T/step.
    b_pad = jnp.zeros((1, N_pad), jnp.float32)
    b_pad = b_pad.at[0, :N].set(
        bias.astype(jnp.float32) * (float(time_step) / float(step)))

    # sum_t scale_t, scale_t = 1/step for t < step else 0.
    x_scale = float(min(time_step, step)) / float(step)

    return dict(w_t=w_t, b=b_pad, bn=bn, bk=bk, N=N, D=D,
                N_pad=N_pad, D_pad=D_pad, x_scale=x_scale)


def _snn_collapsed_kernel(x_ref, w_ref, b_ref, o_ref, *, bk, x_resident):
    """Grid = (N tiles, K tiles); K (feature contraction) is the last axis.

    x_ref : [Bp, D_pad] (resident) or [Bp, bk] (streamed)  bf16 input
    w_ref : [bk, bn]  bf16 pre-transposed weight tile (W^T, [D, N] layout)
    b_ref : [1,  bn]  f32 combined bias = (T/step) * original bias
    o_ref : [Bp, bn]  f32 output tile, resident across K (accumulator)
    """
    k = pl.program_id(1)

    if x_resident:
        off = pl.multiple_of(k * bk, 128)
        x_blk = x_ref[:, pl.ds(off, bk)]
    else:
        x_blk = x_ref[...]

    contrib = jnp.dot(x_blk, w_ref[...], preferred_element_type=jnp.float32)

    @pl.when(k == 0)
    def _():
        o_ref[...] = contrib + b_ref[...]

    @pl.when(k != 0)
    def _():
        o_ref[...] = o_ref[...] + contrib


def snn_wrapper_ms_forward_prepared(x_nchw, prepared):
    """x_nchw: [B, C, H, W] float32; prepared: output of prepare_snn_linear_params."""
    B = x_nchw.shape[0]
    D, N = prepared["D"], prepared["N"]
    bn, bk = prepared["bn"], prepared["bk"]
    N_pad, D_pad = prepared["N_pad"], prepared["D_pad"]
    B_pad = _round_up(B, 16)  # native bf16 (16, 128) sublane tile

    # Temporal-encoding scale folded into the (already required) cast/pad.
    x2d = jnp.zeros((B_pad, D_pad), jnp.bfloat16)
    x2d = x2d.at[:B, :D].set(
        (x_nchw.reshape(B, D) * prepared["x_scale"]).astype(jnp.bfloat16))

    # Hold x fully VMEM-resident unless it is genuinely large.
    x_resident = (B_pad * D_pad * 2) <= 8 * 1024 * 1024
    if x_resident:
        x_spec = pl.BlockSpec((B_pad, D_pad), lambda n, k: (0, 0))
    else:
        x_spec = pl.BlockSpec((B_pad, bk), lambda n, k: (0, k))

    kernel = functools.partial(_snn_collapsed_kernel, bk=bk, x_resident=x_resident)

    out = pl.pallas_call(
        kernel,
        out_shape=jax.ShapeDtypeStruct((B_pad, N_pad), jnp.float32),
        grid_spec=pltpu.PrefetchScalarGridSpec(
            num_scalar_prefetch=0,
            grid=(N_pad // bn, D_pad // bk),
            in_specs=[
                x_spec,                                        # x (resident/streamed)
                pl.BlockSpec((bk, bn), lambda n, k: (k, n)),   # W^T [D, N]
                pl.BlockSpec((1, bn), lambda n, k: (0, n)),    # combined bias
            ],
            out_specs=pl.BlockSpec((B_pad, bn), lambda n, k: (0, n)),
        ),
        compiler_params=pltpu.CompilerParams(
            # N tiles independent (megacore-shardable); K is the reduction axis.
            dimension_semantics=("parallel", "arbitrary"),
            vmem_limit_bytes=48 * 1024 * 1024,
        ),
    )(x2d, prepared["w_t"], prepared["b"])
    return out[:B, :N]


def snn_wrapper_ms_forward(x_nchw, weight, bias, *, time_step, level,
                           bn=512, bk=2048):
    """Convenience one-shot wrapper (prep + forward). For repeated calls,
    call prepare_snn_linear_params once and reuse snn_wrapper_ms_forward_prepared."""
    prepared = prepare_snn_linear_params(weight, bias, time_step=time_step,
                                         level=level, bn=bn, bk=bk)
    return snn_wrapper_ms_forward_prepared(x_nchw, prepared)


def reference_forward(x_nchw, weight, bias, *, time_step, level):
    """Pure-JAX f32 reference implementing the original wrapper semantics
    (explicit per-timestep loop; converted bias = bias/step added every step)."""
    step = level // 2 - 1
    B, C, H, W = x_nchw.shape
    D = C * H * W
    x2d = x_nchw.reshape(B, D).astype(jnp.float32)
    b_conv = bias.astype(jnp.float32) / float(step)
    outs = []
    for t in range(time_step):
        scale = (1.0 / step) if t < step else 0.0
        x_t = x2d * scale
        outs.append(x_t @ weight.T.astype(jnp.float32) + b_conv[None, :])
    return jnp.stack(outs, 0).sum(0)


if __name__ == "__main__":
    # Small deterministic config.
    B, C, H, W = 2, 4, 16, 16        # input x: NCHW
    N_CLASSES = 16
    LEVEL = 8                        # step = level//2 - 1 = 3
    T = 4                            # time_step (> step, exercises zeroed steps)

    key = jax.random.PRNGKey(0)
    kx, kw, kb = jax.random.split(key, 3)
    x = jax.random.normal(kx, (B, C, H, W), dtype=jnp.float32)
    weight = jax.random.normal(kw, (N_CLASSES, C * H * W), dtype=jnp.float32) * 0.02
    bias = jax.random.normal(kb, (N_CLASSES,), dtype=jnp.float32) * 0.1

    # One-time weight prep (load time), then the per-call forward.
    prepared = prepare_snn_linear_params(weight, bias, time_step=T, level=LEVEL)
    out = snn_wrapper_ms_forward_prepared(x, prepared)
    out = jax.block_until_ready(out)

    ref = reference_forward(x, weight, bias, time_step=T, level=LEVEL)
    assert out.shape == (B, N_CLASSES)
    # bf16 inputs on the MXU (f32 accumulation) vs. pure-f32 reference.
    assert jnp.allclose(out, ref, atol=5e-2, rtol=5e-2), (
        f"max abs err {jnp.max(jnp.abs(out - ref))}"
    )
    print("KERNEL_OK")
</pallas_src>

<mosaic_0001>
module attributes {stable_mosaic.version = 11 : i64} {
  func.func @_snn_collapsed_kernel(%arg0: i32, %arg1: i32, %arg2: memref<16x1024xbf16, #tpu.memory_space<vmem>>, %arg3: memref<1024x128xbf16, #tpu.memory_space<vmem>>, %arg4: memref<1x128xf32, #tpu.memory_space<vmem>>, %arg5: memref<16x128xf32, #tpu.memory_space<vmem>>) attributes {dimension_semantics = [#tpu.dimension_semantics<parallel>, #tpu.dimension_semantics<arbitrary>], iteration_bounds = array<i64: 1, 1>, scalar_prefetch = 0 : i64, scratch_operands = 0 : i64, tpu.core_type = #tpu.core_type<tc>, window_params = [{pipeline_mode = #tpu.pipeline_mode<synchronous>, transform_indices = @transform_0, window_bounds = array<i64: 16, 1024>}, {transform_indices = @transform_1, window_bounds = array<i64: 1024, 128>}, {transform_indices = @transform_2, window_bounds = array<i64: 1, 128>}, {transform_indices = @transform_3, window_bounds = array<i64: 16, 128>}]} {
    %c1024_i32 = arith.constant 1024 : i32
    %0 = arith.muli %arg1, %c1024_i32 : i32
    %1 = tpu.assume_multiple %0, 128 : i32
    %c0 = arith.constant 0 : index
    %2 = arith.index_cast %1 : i32 to index
    %3 = vector.load %arg2[%c0, %2] : memref<16x1024xbf16, #tpu.memory_space<vmem>>, vector<16x1024xbf16>
    %c0_0 = arith.constant 0 : index
    %c0_1 = arith.constant 0 : index
    %4 = vector.load %arg3[%c0_0, %c0_1] : memref<1024x128xbf16, #tpu.memory_space<vmem>>, vector<1024x128xbf16>
    %cst = arith.constant dense<0.000000e+00> : vector<16x128xf32>
    %5 = tpu.matmul %3, %4, %cst {dimension_numbers = #tpu.dot_dimension_numbers<[1], [0], [0], [1], [0, 0, 1, 1], [], []>} : vector<16x1024xbf16>, vector<1024x128xbf16>, vector<16x128xf32> -> vector<16x128xf32>
    %c0_i32 = arith.constant 0 : i32
    %6 = arith.cmpi eq, %arg1, %c0_i32 : i32
    %7 = arith.extui %6 : i1 to i32
    %c0_i32_2 = arith.constant 0 : i32
    %8 = arith.cmpi ne, %7, %c0_i32_2 : i32
    scf.if %8 {
      %c0_5 = arith.constant 0 : index
      %c0_6 = arith.constant 0 : index
      %12 = vector.load %arg4[%c0_5, %c0_6] : memref<1x128xf32, #tpu.memory_space<vmem>>, vector<1x128xf32>
      %13 = vector.broadcast %12 : vector<1x128xf32> to vector<16x128xf32>
      %14 = arith.addf %5, %13 : vector<16x128xf32>
      %c0_7 = arith.constant 0 : index
      %c0_8 = arith.constant 0 : index
      %15 = vector.load %arg5[%c0_7, %c0_8] : memref<16x128xf32, #tpu.memory_space<vmem>>, vector<16x128xf32>
      tpu.vector_store %arg5[%c0_7, %c0_8], %14 {strides = array<i32>} : memref<16x128xf32, #tpu.memory_space<vmem>>, vector<16x128xf32>,
    } else {
    }
    %c0_i32_3 = arith.constant 0 : i32
    %9 = arith.cmpi ne, %arg1, %c0_i32_3 : i32
    %10 = arith.extui %9 : i1 to i32
    %c0_i32_4 = arith.constant 0 : i32
    %11 = arith.cmpi ne, %10, %c0_i32_4 : i32
    scf.if %11 {
      %c0_5 = arith.constant 0 : index
      %c0_6 = arith.constant 0 : index
      %12 = vector.load %arg5[%c0_5, %c0_6] : memref<16x128xf32, #tpu.memory_space<vmem>>, vector<16x128xf32>
      %13 = arith.addf %12, %5 : vector<16x128xf32>
      %c0_7 = arith.constant 0 : index
      %c0_8 = arith.constant 0 : index
      %14 = vector.load %arg5[%c0_7, %c0_8] : memref<16x128xf32, #tpu.memory_space<vmem>>, vector<16x128xf32>
      tpu.vector_store %arg5[%c0_7, %c0_8], %13 {strides = array<i32>} : memref<16x128xf32, #tpu.memory_space<vmem>>, vector<16x128xf32>,
    } else {
    }
    return
  }
  func.func @transform_0(%arg0: i32, %arg1: i32) -> (i32, i32) {
    %c0_i32 = arith.constant 0 : i32
    %c0_i32_0 = arith.constant 0 : i32
    %c0_i32_1 = arith.constant 0 : i32
    return %c0_i32, %c0_i32_0 : i32, i32
  }
  func.func @transform_1(%arg0: i32, %arg1: i32) -> (i32, i32) {
    %c0_i32 = arith.constant 0 : i32
    return %arg1, %arg0 : i32, i32
  }
  func.func @transform_2(%arg0: i32, %arg1: i32) -> (i32, i32) {
    %c0_i32 = arith.constant 0 : i32
    %c0_i32_0 = arith.constant 0 : i32
    return %c0_i32, %arg0 : i32, i32
  }
  func.func @transform_3(%arg0: i32, %arg1: i32) -> (i32, i32) {
    %c0_i32 = arith.constant 0 : i32
    %c0_i32_0 = arith.constant 0 : i32
    return %c0_i32, %arg0 : i32, i32
  }
}

</mosaic_0001>

<bundles_post_ra>
// kernel: tpu_custom_call.1
= control target key start
LH: loop header
LB: loop body
LE: loop exit
PB: predicated region body
PF: predicated region fallthrough
CT: control target
= control target key end

     0   :  { %8 = vsyncpa [#allocation3], 0  ;;  %s1257_s0 = inlined_call_operand.hbm [shape: bf16[16,1024], index: 0, kind: input, shape index: {}]   ;;  %s1258_s1 = inlined_call_operand.hbm [shape: bf16[1024,128], index: 1, kind: input, shape index: {}]   ;;  %s1259_s2 = inlined_call_operand.vmem [shape: f32[1,128], index: 2, kind: input, shape index: {}]   ;;  %s1260_s3 = inlined_call_operand.hbm [shape: f32[16,128], index: 3, kind: output, shape index: {}]  }
   0x1   :  { %9 = vsyncpa [#allocation6], 0 }
   0x2   :  { %10 = vsyncpa [#allocation4], 0  ;;  %s15_s14 = sshll.u32 %s1257_s0, 4  ;;  %s1216_s15 = smov [#allocation2]   ;;  %s16_s14 = int_to_ptr.hbm [resolvable:$true] %s15_s14 }
   0x3   :  { %s17_s16 = sshll.u32 %s1216_s15, 4  ;;  %s28_s19 = sshll.u32 %s1258_s1, 4  ;;  %s18_s16 = int_to_ptr.vmem [resolvable:$true] %s17_s16  ;;  %s29_s19 = int_to_ptr.hbm [resolvable:$true] %s28_s19 }
   0x4   :  { %s1217_s20 = smov 512   ;;  %s1218_s21 = smov 32  }
   0x5   :  { %23 = dma.hbm_to_vmem [thread:$0]  %s16_s14, 1024, %s18_s16, [#allocation3], %s1217_s20, %s1217_s20, %s1218_s21  }
   0x6   :  { %s1219_s22 = smov [#allocation5]   ;;  %s1220_s24 = smov 64  }
   0x7   :  { %s30_s23 = sshll.u32 %s1219_s22, 4  ;;  %s1221_s25 = smov 4   ;;  %s31_s23 = int_to_ptr.vmem [resolvable:$true] %s30_s23 }
   0x8   :  { %36 = dma.hbm_to_vmem [thread:$0]  %s29_s19, 8192, %s31_s23, [#allocation6], %s1220_s24, %s1220_s24, %s1221_s25  }
   0x9   :  { %1210 = dma.done.wait [#allocation3], 1024  }
   0xa   :  { %1211 = vsyncadd [#allocation3], 4294966272 }
   0xb   :  { %1212 = dma.done.wait [#allocation6], 8192  }
   0xc   :  { %1213 = vsyncadd [#allocation6], 4294959104  ;;  %v1071_v0 = vld [vmem:[#allocation5 + $0x38] sm:$0xff]  ;;  %v1070_v4 = vld [vmem:[#allocation5 + $0x30] sm:$0xff]  ;;  %s1222_s26 = smov [#allocation7]   ;;  %s752_s30 = sshll.u32 %s1260_s3, 4  ;;  %s753_s30 = int_to_ptr.hbm [resolvable:$true] %s752_s30 }
   0xd   :  { %v1079_v1 = vld [vmem:[#allocation5 + $0x78] sm:$0xff]  ;;  %612 = vmatpush.bf16.msra.mxu0 %v1071_v0  ;;  %v1078_v5 = vld [vmem:[#allocation5 + $0x70] sm:$0xff]  ;;  %v1069_v8 = vld [vmem:[#allocation5 + $0x28] sm:$0xff]  ;;  %s750_s27 = sshll.u32 %s1222_s26, 4  ;;  %s1224_s4 = smov 8   ;;  %s751_s27 = int_to_ptr.vmem [resolvable:$true] %s750_s27 }
   0xe   :  { %v1087_v2 = vld [vmem:[#allocation5 + $0xb8] sm:$0xff]  ;;  %626 = vmatpush.bf16.msra.mxu1 %v1079_v1  ;;  %v1086_v6 = vld [vmem:[#allocation5 + $0xb0] sm:$0xff]  ;;  %v1077_v9 = vld [vmem:[#allocation5 + $0x68] sm:$0xff] }
   0xf   :  { %v1095_v3 = vld [vmem:[#allocation5 + $0xf8] sm:$0xff]  ;;  %640 = vmatpush.bf16.msra.mxu2 %v1087_v2  ;;  %v1094_v7 = vld [vmem:[#allocation5 + $0xf0] sm:$0xff]  ;;  %v1085_v10 = vld [vmem:[#allocation5 + $0xa8] sm:$0xff] }
  0x10   :  { %654 = vmatpush.bf16.msra.mxu3 %v1095_v3  ;;  %v1093_v11 = vld [vmem:[#allocation5 + $0xe8] sm:$0xff]  ;;  %v1068_v12 = vld [vmem:[#allocation5 + $0x20] sm:$0xff]  ;;  %v1067_v16 = vld [vmem:[#allocation5 + $0x18] sm:$0xff] }
  0x11   :  { %613 = vmatpush.bf16.msra.mxu0 %v1070_v4  ;;  %v1076_v13 = vld [vmem:[#allocation5 + $0x60] sm:$0xff]  ;;  %v1075_v17 = vld [vmem:[#allocation5 + $0x58] sm:$0xff]  ;;  %v1066_v20 = vld [vmem:[#allocation5 + $0x10] sm:$0xff] }
  0x12   :  { %627 = vmatpush.bf16.msra.mxu1 %v1078_v5  ;;  %v1084_v14 = vld [vmem:[#allocation5 + $0xa0] sm:$0xff]  ;;  %v1083_v18 = vld [vmem:[#allocation5 + $0x98] sm:$0xff]  ;;  %v1074_v21 = vld [vmem:[#allocation5 + $0x50] sm:$0xff] }
  0x13   :  { %641 = vmatpush.bf16.msra.mxu2 %v1086_v6  ;;  %v1092_v15 = vld [vmem:[#allocation5 + $0xe0] sm:$0xff]  ;;  %v1091_v19 = vld [vmem:[#allocation5 + $0xd8] sm:$0xff]  ;;  %v1082_v22 = vld [vmem:[#allocation5 + $0x90] sm:$0xff] }
  0x14   :  { %655 = vmatpush.bf16.msra.mxu3 %v1094_v7  ;;  %v1090_v23 = vld [vmem:[#allocation5 + $0xd0] sm:$0xff]  ;;  %v1065_v24 = vld [vmem:[#allocation5 + $0x8] sm:$0xff]  ;;  %v1064_v28 = vld [vmem:[#allocation5] sm:$0xff] }
  0x15   :  { %614 = vmatpush.bf16.msra.mxu0 %v1069_v8  ;;  %v1073_v25 = vld [vmem:[#allocation5 + $0x48] sm:$0xff]  ;;  %v1072_v29 = vld [vmem:[#allocation5 + $0x40] sm:$0xff]  ;;  %v1103_v32 = vld [vmem:[#allocation5 + $0x138] sm:$0xff] }
  0x16   :  { %628 = vmatpush.bf16.msra.mxu1 %v1077_v9  ;;  %v1081_v26 = vld [vmem:[#allocation5 + $0x88] sm:$0xff]  ;;  %v1080_v30 = vld [vmem:[#allocation5 + $0x80] sm:$0xff]  ;;  %v1111_v33 = vld [vmem:[#allocation5 + $0x178] sm:$0xff] }
  0x17   :  { %642 = vmatpush.bf16.msra.mxu2 %v1085_v10  ;;  %v1089_v27 = vld [vmem:[#allocation5 + $0xc8] sm:$0xff]  ;;  %v1088_v31 = vld [vmem:[#allocation5 + $0xc0] sm:$0xff]  ;;  %v1119_v42 = vld [vmem:[#allocation5 + $0x1b8] sm:$0xff] }
  0x18   :  { %656 = vmatpush.bf16.msra.mxu3 %v1093_v11  ;;  %v778_v34 = vld [vmem:[#allocation2 + $0x8] sm:$0xf]  ;;  %v1057_v36 = vld [vmem:[#allocation2 + $0xc] sm:$0xf]  ;;  %v770_v38 = vld [vmem:[#allocation2] sm:$0xf] }
  0x19   :  { %615 = vmatpush.bf16.msra.mxu0 %v1068_v12  ;;  %v1061_v35 = vld [vmem:[#allocation2 + $0x24] sm:$0xf0]  ;;  %v780_v37 = vld [vmem:[#allocation2 + $0x28] sm:$0xf0]  ;;  %v1060_v39 = vld [vmem:[#allocation2 + $0x1c] sm:$0xf0] }
  0x1a   :  { %629 = vmatpush.bf16.msra.mxu1 %v1076_v13  ;;  %v1056_v40 = vld [vmem:[#allocation2 + $0x4] sm:$0xf]  ;;  %v1127_v43 = vld [vmem:[#allocation5 + $0x1f8] sm:$0xff]  ;;  %v779_v44 = vor.u32 %v1061_v35, %v778_v34  ;;  %v783_v45 = vor.u32 %v1057_v36, %v780_v37  ;;  %v771_v46 = vor.u32 %v1060_v39, %v770_v38  ;;  %v1102_v48 = vld [vmem:[#allocation5 + $0x130] sm:$0xff] }
  0x1b   :  { %643 = vmatpush.bf16.msra.mxu2 %v1084_v14  ;;  %v772_v41 = vld [vmem:[#allocation2 + $0x20] sm:$0xf0]  ;;  %v1110_v49 = vld [vmem:[#allocation5 + $0x170] sm:$0xff]  ;;  %v1101_v52 = vld [vmem:[#allocation5 + $0x128] sm:$0xff] }
  0x1c   :  { %657 = vmatpush.bf16.msra.mxu3 %v1092_v15  ;;  %v775_v47 = vor.u32 %v1056_v40, %v772_v41  ;;  %v1118_v50 = vld [vmem:[#allocation5 + $0x1b0] sm:$0xff]  ;;  %v1109_v53 = vld [vmem:[#allocation5 + $0x168] sm:$0xff]  ;;  %v1100_v56 = vld [vmem:[#allocation5 + $0x120] sm:$0xff] }
  0x1d   :  { %616 = vmatpush.bf16.msra.mxu0 %v1067_v16  ;;  %v1126_v51 = vld [vmem:[#allocation5 + $0x1f0] sm:$0xff]  ;;  %v1117_v54 = vld [vmem:[#allocation5 + $0x1a8] sm:$0xff]  ;;  %v1108_v57 = vld [vmem:[#allocation5 + $0x160] sm:$0xff] }
  0x1e   :  { %630 = vmatpush.bf16.msra.mxu1 %v1075_v17  ;;  %v1125_v55 = vld [vmem:[#allocation5 + $0x1e8] sm:$0xff]  ;;  %v1116_v58 = vld [vmem:[#allocation5 + $0x1a0] sm:$0xff]  ;;  %v1099_v60 = vld [vmem:[#allocation5 + $0x118] sm:$0xff] }
  0x1f   :  { %644 = vmatpush.bf16.msra.mxu2 %v1083_v18  ;;  %v1124_v59 = vld [vmem:[#allocation5 + $0x1e0] sm:$0xff]  ;;  %v1107_v61 = vld [vmem:[#allocation5 + $0x158] sm:$0xff]  ;;  %v1098_v0 = vld [vmem:[#allocation5 + $0x110] sm:$0xff] }
  0x20   :  { %658 = vmatpush.bf16.msra.mxu3 %v1091_v19  ;;  %v1115_v62 = vld [vmem:[#allocation5 + $0x198] sm:$0xff]  ;;  %v1106_v1 = vld [vmem:[#allocation5 + $0x150] sm:$0xff]  ;;  %v1097_v4 = vld [vmem:[#allocation5 + $0x108] sm:$0xff] }
  0x21   :  { %617 = vmatpush.bf16.msra.mxu0 %v1066_v20  ;;  %v1123_v63 = vld [vmem:[#allocation5 + $0x1d8] sm:$0xff]  ;;  %v1114_v2 = vld [vmem:[#allocation5 + $0x190] sm:$0xff]  ;;  %v1105_v5 = vld [vmem:[#allocation5 + $0x148] sm:$0xff] }
  0x22   :  { %631 = vmatpush.bf16.msra.mxu1 %v1074_v21  ;;  %v1122_v3 = vld [vmem:[#allocation5 + $0x1d0] sm:$0xff]  ;;  %v1113_v6 = vld [vmem:[#allocation5 + $0x188] sm:$0xff]  ;;  %v1096_v8 = vld [vmem:[#allocation5 + $0x100] sm:$0xff] }
  0x23   :  { %645 = vmatpush.bf16.msra.mxu2 %v1082_v22  ;;  %v1121_v7 = vld [vmem:[#allocation5 + $0x1c8] sm:$0xff]  ;;  %v1104_v9 = vld [vmem:[#allocation5 + $0x140] sm:$0xff]  ;;  %v786_v12 = vld [vmem:[#allocation2 + $0x10] sm:$0xf] }
  0x24   :  { %659 = vmatpush.bf16.msra.mxu3 %v1090_v23  ;;  %v1112_v10 = vld [vmem:[#allocation5 + $0x180] sm:$0xff]  ;;  %v1062_v13 = vld [vmem:[#allocation2 + $0x2c] sm:$0xf0]  ;;  %v1058_v14 = vld [vmem:[#allocation2 + $0x14] sm:$0xf] }
  0x25   :  { %618 = vmatpush.bf16.msra.mxu0 %v1065_v24  ;;  %v1120_v11 = vld [vmem:[#allocation5 + $0x1c0] sm:$0xff]  ;;  %v788_v15 = vld [vmem:[#allocation2 + $0x30] sm:$0xf0]  ;;  %v794_v16 = vld [vmem:[#allocation2 + $0x18] sm:$0xf]  ;;  %v787_v20 = vor.u32 %v1062_v13, %v786_v12 }
  0x26   :  { %632 = vmatpush.bf16.msra.mxu1 %v1073_v25  ;;  %v1063_v17 = vld [vmem:[#allocation2 + $0x34] sm:$0xf0]  ;;  %v1059_v18 = vld [vmem:[#allocation2 + $0x1c] sm:$0xf]  ;;  %v791_v21 = vor.u32 %v1058_v14, %v788_v15 }
  0x27   :  { %646 = vmatpush.bf16.msra.mxu2 %v1081_v26  ;;  %v796_v19 = vld [vmem:[#allocation2 + $0x38] sm:$0xf0]  ;;  %v795_v22 = vor.u32 %v1063_v17, %v794_v16 }
  0x28   :  { %660 = vmatpush.bf16.msra.mxu3 %v1089_v27  ;;  %v799_v23 = vor.u32 %v1059_v18, %v796_v19 }
  0x29   :  { %619 = vmatpush.bf16.msra.mxu0 %v1064_v28 }
  0x2a   :  { %633 = vmatpush.bf16.msra.mxu1 %v1072_v29 }
  0x2b   :  { %647 = vmatpush.bf16.msra.mxu2 %v1080_v30 }
  0x2c   :  { %661 = vmatpush.bf16.msra.mxu3 %v1088_v31  ;;  %620 = vmatmul.bf16.vlgmr.msra.gmra.mxu0 %v771_v46 }
  0x2d   :  { %668 = vmatpush.bf16.msrb.mxu0 %v1103_v32  ;;  %634 = vmatmul.bf16.vlgmr.msra.gmra.mxu1 %v775_v47 }
  0x2e   :  { %682 = vmatpush.bf16.msrb.mxu1 %v1111_v33  ;;  %648 = vmatmul.bf16.vlgmr.msra.gmra.mxu2 %v779_v44 }
  0x2f   :  { %696 = vmatpush.bf16.msrb.mxu2 %v1119_v42  ;;  %662 = vmatmul.bf16.vlgmr.msra.gmra.mxu3 %v783_v45  ;;  %v1137_v45 = vld [vmem:[%s1259_s2] ss:$0 sm:$0xff]  ;;  %s1223_s2 = smov 128  }
  0x30   :  { %710 = vmatpush.bf16.msrb.mxu3 %v1127_v43 }
  0x31   :  { %669 = vmatpush.bf16.msrb.mxu0 %v1102_v48 }
  0x32   :  { %683 = vmatpush.bf16.msrb.mxu1 %v1110_v49 }
  0x33   :  { %697 = vmatpush.bf16.msrb.mxu2 %v1118_v50 }
  0x34   :  { %711 = vmatpush.bf16.msrb.mxu3 %v1126_v51 }
  0x35   :  { %670 = vmatpush.bf16.msrb.mxu0 %v1101_v52 }
  0x36   :  { %684 = vmatpush.bf16.msrb.mxu1 %v1109_v53 }
  0x37   :  { %698 = vmatpush.bf16.msrb.mxu2 %v1117_v54 }
  0x38   :  { %712 = vmatpush.bf16.msrb.mxu3 %v1125_v55 }
  0x39   :  { %671 = vmatpush.bf16.msrb.mxu0 %v1100_v56 }
  0x3a   :  { %685 = vmatpush.bf16.msrb.mxu1 %v1108_v57 }
  0x3b   :  { %699 = vmatpush.bf16.msrb.mxu2 %v1116_v58 }
  0x3c   :  { %713 = vmatpush.bf16.msrb.mxu3 %v1124_v59 }
  0x3d   :  { %672 = vmatpush.bf16.msrb.mxu0 %v1099_v60 }
  0x3e   :  { %686 = vmatpush.bf16.msrb.mxu1 %v1107_v61 }
  0x3f   :  { %700 = vmatpush.bf16.msrb.mxu2 %v1115_v62 }
  0x40   :  { %714 = vmatpush.bf16.msrb.mxu3 %v1123_v63 }
  0x41   :  { %673 = vmatpush.bf16.msrb.mxu0 %v1098_v0 }
  0x42   :  { %687 = vmatpush.bf16.msrb.mxu1 %v1106_v1 }
  0x43   :  { %701 = vmatpush.bf16.msrb.mxu2 %v1114_v2 }
  0x44   :  { %715 = vmatpush.bf16.msrb.mxu3 %v1122_v3 }
  0x45   :  { %674 = vmatpush.bf16.msrb.mxu0 %v1097_v4 }
  0x46   :  { %688 = vmatpush.bf16.msrb.mxu1 %v1105_v5 }
  0x47   :  { %702 = vmatpush.bf16.msrb.mxu2 %v1113_v6 }
  0x48   :  { %716 = vmatpush.bf16.msrb.mxu3 %v1121_v7 }
  0x49   :  { %675 = vmatpush.bf16.msrb.mxu0 %v1096_v8 }
  0x4a   :  { %689 = vmatpush.bf16.msrb.mxu1 %v1104_v9 }
  0x4b   :  { %703 = vmatpush.bf16.msrb.mxu2 %v1112_v10 }
  0x4c   :  { %717 = vmatpush.bf16.msrb.mxu3 %v1120_v11  ;;  %676 = vmatmul.bf16.vlgmr.msrb.gmra.mxu0 %v787_v20 }
  0x4d   :  { %690 = vmatmul.bf16.vlgmr.msrb.gmra.mxu1 %v791_v21 }
  0x4e   :  { %704 = vmatmul.bf16.vlgmr.msrb.gmra.mxu2 %v795_v22 }
  0x4f   :  { %718 = vmatmul.bf16.vlgmr.msrb.gmra.mxu3 %v799_v23 }
  0xa9   :  { %v621_v24 = vpop.f32.mrf.mxu0 }
  0xaa   :  { %v635_v25 = vpop.f32.mrf.mxu1 }
  0xab   :  { %v636_v28 = vadd.f32 %v635_v25, %v621_v24 }
  0xb1   :  { %v649_v26 = vpop.f32.mrf.mxu2  ;;  %v623_v29 = vpop.f32.mrf.mxu0 }
  0xb2   :  { %v663_v27 = vpop.f32.mrf.mxu3  ;;  %v637_v30 = vpop.f32.mrf.mxu1  ;;  %v650_v31 = vadd.f32 %v649_v26, %v636_v28 }
  0xb3   :  { %v638_v35 = vadd.f32 %v637_v30, %v623_v29 }
  0xb4   :  { %v664_v34 = vadd.f32 %v663_v27, %v650_v31 }
  0xb9   :  { %v651_v32 = vpop.f32.mrf.mxu2 }
  0xba   :  { %v665_v33 = vpop.f32.mrf.mxu3  ;;  %v652_v39 = vadd.f32 %v651_v32, %v638_v35 }
  0xbc   :  { %v666_v43 = vadd.f32 %v665_v33, %v652_v39 }
  0xc9   :  { %v677_v36 = vpop.f32.mrf.mxu0 }
  0xca   :  { %v678_v37 = vadd.f32 %v677_v36, %v664_v34  ;;  %v691_v38 = vpop.f32.mrf.mxu1 }
  0xcc   :  { %v692_v40 = vadd.f32 %v691_v38, %v678_v37 }
  0xd1   :  { %v705_v41 = vpop.f32.mrf.mxu2  ;;  %v679_v46 = vpop.f32.mrf.mxu0 }
  0xd2   :  { %v719_v42 = vpop.f32.mrf.mxu3  ;;  %v706_v44 = vadd.f32 %v705_v41, %v692_v40  ;;  %v680_v48 = vadd.f32 %v679_v46, %v666_v43  ;;  %v693_v50 = vpop.f32.mrf.mxu1 }
  0xd4   :  { %v720_v47 = vadd.f32 %v719_v42, %v706_v44  ;;  %v694_v51 = vadd.f32 %v693_v50, %v680_v48 }
  0xd6   :  { %v732_v49 = vadd.f32 %v1137_v45, %v720_v47 }
  0xd8   :  { %734 = vst [vmem:[#allocation7] sm:$0xff] %v732_v49 }
  0xd9   :  { %v707_v52 = vpop.f32.mrf.mxu2 }
  0xda   :  { %v708_v53 = vadd.f32 %v707_v52, %v694_v51  ;;  %v721_v54 = vpop.f32.mrf.mxu3 }
  0xdc   :  { %v722_v55 = vadd.f32 %v721_v54, %v708_v53 }
  0xde   :  { %v733_v56 = vadd.f32 %v1137_v45, %v722_v55 }
  0xe0   :  { %735 = vst [vmem:[#allocation7 + $0x8] sm:$0xff] %v733_v56 }
  0xe1   :  { %758 = dma.vmem_to_hbm [thread:$0]  %s751_s27, 256, %s753_s30, [#allocation4], %s1223_s2, %s1223_s2, %s1224_s4  }
  0xe2   :  { %1214 = dma.done.wait [#allocation4], 256  }
  0xe3   :  { %1215 = vsyncadd [#allocation4], 4294967040 }
  0xe4   :  { %763 = vsyncpa [#allocation3], 1 }
  0xe5   :  { %764 = vsyncpa [#allocation6], 1 }
  0xe6   :  { %765 = vsyncpa [#allocation4], 1 }

</bundles_post_ra>
